<compile_context>
chip_gen: v6e
topology: v6e:2x2x1
jax: 0.10.0
libtpu: 0.0.40
codegen_flags: <defaults>
</compile_context>

<pallas_src>
import functools

import jax
import jax.numpy as jnp
from jax.experimental import pallas as pl
from jax.experimental.pallas import tpu as pltpu


def _zlayer_chunk_kernel(x_ref, w_ref, scal_ref, out_ref, y_ref, *,
                         t_chunk, b_blk, d, unroll):
    """One grid step = one (batch block, chunk of t_chunk timesteps).

    x_ref:    (t_chunk, b_blk, D) VMEM   input block
    w_ref:    (1, D)              VMEM   x-part of the Linear weight (replicated)
    scal_ref: (1, 2)              SMEM   [w_z, bias]
    out_ref:  (t_chunk, b_blk)    VMEM   lane-dense output block (batch on lanes)
    y_ref:    (1, b_blk)          VMEM   carried tanh-state y = 2*z - 1

    INVARIANT: grid axis 1 (chunks of T) must stay "arbitrary" (sequential);
    the recurrence state is carried in y_ref across it.  Grid axis 0 (batch
    blocks) is genuinely parallel: the state is re-initialized at chunk 0.
    """
    c = pl.program_id(1)

    @pl.when(c == 0)
    def _():
        # z_0 = 0  <=>  y_0 = 2*z_0 - 1 = -1
        y_ref[...] = jnp.full((1, b_blk), -1.0, jnp.float32)

    w_z = scal_ref[0, 0]
    bias = scal_ref[0, 1]
    # Fold the sigmoid->tanh 0.5 scalings once per chunk (SMEM scalar math +
    # one vector scale of the weight row), and pre-splat/broadcast everything
    # that is loop-invariant so no broadcast is re-emitted per iteration.
    c0 = 0.5 * bias + 0.25 * w_z
    c1 = 0.25 * w_z
    c0_v = jnp.full((1, b_blk), c0, jnp.float32)
    c1_v = jnp.full((1, b_blk), c1, jnp.float32)
    half = jnp.full((1, b_blk), 0.5, jnp.float32)
    w_h = jnp.broadcast_to((w_ref[...] * jnp.float32(0.5))[None], (1, b_blk, d))

    def step(t, y):
        # Off-chain work (independent of the carried y): load x_t and project.
        # With unrolling these interleave into the EUP bubbles of the chain.
        x_t = x_ref[pl.ds(t, 1), :, :]                 # (1, b_blk, D)
        a_t = jnp.sum(x_t * w_h, axis=-1) + c0_v       # (1, b_blk)
        # Loop-carried chain: mul, add, tanh (single EUP op per step).
        y = jnp.tanh(a_t + c1_v * y)
        # Off-chain: convert back to z = sigmoid(u) and store the final row.
        out_ref[pl.ds(t, 1), :] = half * y + half
        return y

    y_ref[...] = jax.lax.fori_loop(0, t_chunk, step, y_ref[...], unroll=unroll)


def _round_up(v, m):
    return -(-v // m) * m


def _vmem_caps():
    """Generation-aware budgets: x-slab budget and explicit scoped-VMEM limit."""
    cap = None
    try:
        cap = int(pltpu.get_tpu_info().vmem_capacity_bytes)
    except Exception:
        cap = None
    if not cap or cap <= 0:
        cap = 64 << 20                      # conservative: v7x per-core VMEM
    x_budget = min(cap // 4, 24 << 20)      # double-buffered x slab budget
    vmem_limit = min(cap // 2, 48 << 20)    # explicit limit, generous headroom
    return x_budget, vmem_limit


def _choose_t_chunk(T, b_blk, D, x_budget_bytes):
    """Largest multiple-of-8 chunk whose double-buffered x + output blocks fit
    the budget (using Mosaic's padded sublane/lane layout).  T is later padded
    up to a multiple of the chunk, so there is no over-budget fallback."""
    x_row = _round_up(b_blk, 8) * _round_up(D, 128) * 4
    out_row = _round_up(b_blk, 128) * 4
    per_step = 2 * (x_row + out_row)
    cap = max(8, (x_budget_bytes // per_step) // 8 * 8)
    return int(min(cap, _round_up(T, 8)))


def zlayer_forward(x, weight, bias, t_chunk=None):
    """x: (T, B, D) f32; weight: (1, D+1) f32; bias: (1,) f32 -> (T, B) f32."""
    T, B, D = x.shape
    x = x.astype(jnp.float32)
    w_x = weight[:, :D].reshape(1, D).astype(jnp.float32)               # (1, D)
    scalars = jnp.stack([weight[0, D], bias[0]]).reshape(1, 2)          # (1, 2)
    scalars = scalars.astype(jnp.float32)

    # Leading batch-parallel grid axis (v7x megacore).  Only split when the
    # resulting output blocks stay lane-dense (b_blk a multiple of 128).
    b_blk = B // 2 if (B >= 256 and B % 256 == 0) else B
    n_b = B // b_blk

    x_budget, vmem_limit = _vmem_caps()
    if t_chunk is None:
        t_chunk = _choose_t_chunk(T, b_blk, D, x_budget)
    assert t_chunk % 8 == 0, t_chunk

    n_c = -(-T // t_chunk)
    T_pad = n_c * t_chunk
    if T_pad != T:
        # Zero-pad the tail; the recurrence only flows forward, so padded
        # timesteps cannot affect the first T outputs (sliced off below).
        x = jnp.pad(x, ((0, T_pad - T), (0, 0), (0, 0)))

    # Full unroll for short chunks; deeper partial unroll (16) for long chunks
    # gives the LLO scheduler more independent projection work between
    # dependent EUP pushes.
    unroll = True if t_chunk <= 64 else 16

    kernel = functools.partial(_zlayer_chunk_kernel, t_chunk=t_chunk,
                               b_blk=b_blk, d=D, unroll=unroll)

    out = pl.pallas_call(
        kernel,
        out_shape=jax.ShapeDtypeStruct((T_pad, B), jnp.float32),
        grid_spec=pltpu.PrefetchScalarGridSpec(
            num_scalar_prefetch=0,
            grid=(n_b, n_c),
            in_specs=[
                pl.BlockSpec((t_chunk, b_blk, D), lambda b, c: (c, b, 0)),
                pl.BlockSpec((1, D), lambda b, c: (0, 0)),
                pl.BlockSpec(memory_space=pltpu.MemorySpace.SMEM),
            ],
            out_specs=pl.BlockSpec((t_chunk, b_blk), lambda b, c: (c, b)),
            scratch_shapes=[pltpu.VMEM((1, b_blk), jnp.float32)],
        ),
        compiler_params=pltpu.CompilerParams(
            # Batch blocks are independent (parallel / megacore-shardable);
            # the recurrence is carried across the chunk axis -> sequential.
            dimension_semantics=("parallel", "arbitrary"),
            vmem_limit_bytes=vmem_limit,
        ),
    )(x, w_x, scalars)

    out = out[:T] if T_pad != T else out
    # PyTorch's outputs.squeeze_() gives (T, B) for B > 1 (its intended
    # regime); the B == 1 / T == 1 squeeze edge cases are not reproduced here.
    return out


def zlayer_reference(x, weight, bias):
    """Pure-JAX reference of the PyTorch loop (sigmoid form)."""
    T, B, D = x.shape
    w_x = weight[:, :D].T        # (D, 1)
    w_z = weight[0, D]
    b = bias[0]

    def step(z, x_t):
        pz = jax.nn.sigmoid(x_t @ w_x + z * w_z + b)
        return pz, pz[:, 0]

    z0 = jnp.zeros((B, 1), jnp.float32)
    _, ys = jax.lax.scan(step, z0, x)
    return ys  # (T, B)


if __name__ == "__main__":
    T, B, D = 16, 8, 32

    key = jax.random.PRNGKey(0)
    kx, kw, kb = jax.random.split(key, 3)

    x = jax.random.normal(kx, (T, B, D), dtype=jnp.float32)

    # Deterministic nn.Linear(D+1, 1)-style init: U(-1/sqrt(fan_in), +1/sqrt(fan_in))
    bound = 1.0 / jnp.sqrt(jnp.float32(D + 1))
    weight = jax.random.uniform(kw, (1, D + 1), minval=-bound, maxval=bound,
                                dtype=jnp.float32)
    bias = jax.random.uniform(kb, (1,), minval=-bound, maxval=bound,
                              dtype=jnp.float32)

    ref = zlayer_reference(x, weight, bias)

    # t_chunk=8 -> 2 chunks, exercising the cross-chunk state carry.
    out = zlayer_forward(x, weight, bias, t_chunk=8)
    out = jax.block_until_ready(out)
    assert out.shape == (T, B), out.shape
    assert jnp.allclose(out, ref, atol=1e-5, rtol=1e-5), (
        f"max err {jnp.max(jnp.abs(out - ref))}")

    # Auto chunk-selection path (single chunk here).
    out2 = jax.block_until_ready(zlayer_forward(x, weight, bias))
    assert out2.shape == (T, B), out2.shape
    assert jnp.allclose(out2, ref, atol=1e-5, rtol=1e-5), (
        f"max err {jnp.max(jnp.abs(out2 - ref))}")

    print("KERNEL_OK")
</pallas_src>

<mosaic_0001>
module attributes {stable_mosaic.version = 11 : i64} {
  func.func @_zlayer_chunk_kernel(%arg0: i32, %arg1: i32, %arg2: memref<8x8x32xf32, #tpu.memory_space<vmem>>, %arg3: memref<1x32xf32, #tpu.memory_space<vmem>>, %arg4: memref<1x2xf32, #tpu.memory_space<smem>>, %arg5: memref<8x8xf32, #tpu.memory_space<vmem>>, %arg6: memref<1x8xf32, #tpu.memory_space<vmem>>) attributes {dimension_semantics = [#tpu.dimension_semantics<parallel>, #tpu.dimension_semantics<arbitrary>], iteration_bounds = array<i64: 1, 2>, scalar_prefetch = 0 : i64, scratch_operands = 1 : i64, tpu.core_type = #tpu.core_type<tc>, window_params = [{transform_indices = @transform_0, window_bounds = array<i64: 8, 8, 32>}, {pipeline_mode = #tpu.pipeline_mode<synchronous>, transform_indices = @transform_1, window_bounds = array<i64: 1, 32>}, {transform_indices = @transform_2, window_bounds = array<i64: 1, 2>}, {transform_indices = @transform_3, window_bounds = array<i64: 8, 8>}]} {
    %c0_i32 = arith.constant 0 : i32
    %0 = arith.cmpi eq, %arg1, %c0_i32 : i32
    %1 = arith.extui %0 : i1 to i32
    %c0_i32_0 = arith.constant 0 : i32
    %2 = arith.cmpi ne, %1, %c0_i32_0 : i32
    scf.if %2 {
      %cst_46 = arith.constant -1.000000e+00 : f32
      %116 = vector.broadcast %cst_46 : f32 to vector<1x8xf32>
      %c0_47 = arith.constant 0 : index
      %c0_48 = arith.constant 0 : index
      %117 = vector.load %arg6[%c0_47, %c0_48] : memref<1x8xf32, #tpu.memory_space<vmem>>, vector<1x8xf32>
      tpu.vector_store %arg6[%c0_47, %c0_48], %116 {strides = array<i32>} : memref<1x8xf32, #tpu.memory_space<vmem>>, vector<1x8xf32>,
    } else {
    }
    %c0 = arith.constant 0 : index
    %c0_1 = arith.constant 0 : index
    %3 = memref.load %arg4[%c0, %c0_1] : memref<1x2xf32, #tpu.memory_space<smem>>
    %c0_2 = arith.constant 0 : index
    %c1 = arith.constant 1 : index
    %4 = memref.load %arg4[%c0_2, %c1] : memref<1x2xf32, #tpu.memory_space<smem>>
    %cst = arith.constant 5.000000e-01 : f32
    %5 = arith.mulf %cst, %4 : f32
    %cst_3 = arith.constant 2.500000e-01 : f32
    %6 = arith.mulf %cst_3, %3 : f32
    %7 = arith.addf %5, %6 : f32
    %cst_4 = arith.constant 2.500000e-01 : f32
    %8 = arith.mulf %cst_4, %3 : f32
    %9 = vector.broadcast %7 : f32 to vector<1x8xf32>
    %10 = vector.broadcast %8 : f32 to vector<1x8xf32>
    %cst_5 = arith.constant 5.000000e-01 : f32
    %11 = vector.broadcast %cst_5 : f32 to vector<1x8xf32>
    %c0_6 = arith.constant 0 : index
    %c0_7 = arith.constant 0 : index
    %12 = vector.load %arg3[%c0_6, %c0_7] : memref<1x32xf32, #tpu.memory_space<vmem>>, vector<1x32xf32>
    %cst_8 = arith.constant 5.000000e-01 : f32
    %13 = vector.broadcast %cst_8 : f32 to vector<1x32xf32>
    %14 = arith.mulf %12, %13 : vector<1x32xf32>
    %15 = vector.shape_cast %14 : vector<1x32xf32> to vector<1x1x32xf32>
    %16 = vector.shape_cast %15 : vector<1x1x32xf32> to vector<1x1x32xf32>
    %17 = vector.broadcast %16 : vector<1x1x32xf32> to vector<1x8x32xf32>
    %c0_9 = arith.constant 0 : index
    %c0_10 = arith.constant 0 : index
    %18 = vector.load %arg6[%c0_9, %c0_10] : memref<1x8xf32, #tpu.memory_space<vmem>>, vector<1x8xf32>
    %c0_i32_11 = arith.constant 0 : i32
    %19 = arith.index_cast %c0_i32_11 : i32 to index
    %c0_12 = arith.constant 0 : index
    %c0_13 = arith.constant 0 : index
    %20 = vector.load %arg2[%19, %c0_12, %c0_13] : memref<8x8x32xf32, #tpu.memory_space<vmem>>, vector<1x8x32xf32>
    %21 = arith.mulf %20, %17 : vector<1x8x32xf32>
    %cst_14 = arith.constant dense<0.000000e+00> : vector<1x8xf32>
    %22 = vector.multi_reduction <add>, %21, %cst_14 [2] : vector<1x8x32xf32> to vector<1x8xf32>
    %23 = arith.addf %22, %9 : vector<1x8xf32>
    %24 = arith.mulf %10, %18 : vector<1x8xf32>
    %25 = arith.addf %23, %24 : vector<1x8xf32>
    %26 = math.tanh %25 : vector<1x8xf32>
    %27 = arith.mulf %11, %26 : vector<1x8xf32>
    %28 = arith.addf %27, %11 : vector<1x8xf32>
    %29 = arith.index_cast %c0_i32_11 : i32 to index
    %c0_15 = arith.constant 0 : index
    %30 = vector.load %arg5[%29, %c0_15] : memref<8x8xf32, #tpu.memory_space<vmem>>, vector<1x8xf32>
    tpu.vector_store %arg5[%29, %c0_15], %28 {strides = array<i32>} : memref<8x8xf32, #tpu.memory_space<vmem>>, vector<1x8xf32>,
    %c1_i32 = arith.constant 1 : i32
    %31 = arith.index_cast %c1_i32 : i32 to index
    %c0_16 = arith.constant 0 : index
    %c0_17 = arith.constant 0 : index
    %32 = vector.load %arg2[%31, %c0_16, %c0_17] : memref<8x8x32xf32, #tpu.memory_space<vmem>>, vector<1x8x32xf32>
    %33 = arith.mulf %32, %17 : vector<1x8x32xf32>
    %cst_18 = arith.constant dense<0.000000e+00> : vector<1x8xf32>
    %34 = vector.multi_reduction <add>, %33, %cst_18 [2] : vector<1x8x32xf32> to vector<1x8xf32>
    %35 = arith.addf %34, %9 : vector<1x8xf32>
    %36 = arith.mulf %10, %26 : vector<1x8xf32>
    %37 = arith.addf %35, %36 : vector<1x8xf32>
    %38 = math.tanh %37 : vector<1x8xf32>
    %39 = arith.mulf %11, %38 : vector<1x8xf32>
    %40 = arith.addf %39, %11 : vector<1x8xf32>
    %41 = arith.index_cast %c1_i32 : i32 to index
    %c0_19 = arith.constant 0 : index
    %42 = vector.load %arg5[%41, %c0_19] : memref<8x8xf32, #tpu.memory_space<vmem>>, vector<1x8xf32>
    tpu.vector_store %arg5[%41, %c0_19], %40 {strides = array<i32>} : memref<8x8xf32, #tpu.memory_space<vmem>>, vector<1x8xf32>,
    %c2_i32 = arith.constant 2 : i32
    %43 = arith.index_cast %c2_i32 : i32 to index
    %c0_20 = arith.constant 0 : index
    %c0_21 = arith.constant 0 : index
    %44 = vector.load %arg2[%43, %c0_20, %c0_21] : memref<8x8x32xf32, #tpu.memory_space<vmem>>, vector<1x8x32xf32>
    %45 = arith.mulf %44, %17 : vector<1x8x32xf32>
    %cst_22 = arith.constant dense<0.000000e+00> : vector<1x8xf32>
    %46 = vector.multi_reduction <add>, %45, %cst_22 [2] : vector<1x8x32xf32> to vector<1x8xf32>
    %47 = arith.addf %46, %9 : vector<1x8xf32>
    %48 = arith.mulf %10, %38 : vector<1x8xf32>
    %49 = arith.addf %47, %48 : vector<1x8xf32>
    %50 = math.tanh %49 : vector<1x8xf32>
    %51 = arith.mulf %11, %50 : vector<1x8xf32>
    %52 = arith.addf %51, %11 : vector<1x8xf32>
    %53 = arith.index_cast %c2_i32 : i32 to index
    %c0_23 = arith.constant 0 : index
    %54 = vector.load %arg5[%53, %c0_23] : memref<8x8xf32, #tpu.memory_space<vmem>>, vector<1x8xf32>
    tpu.vector_store %arg5[%53, %c0_23], %52 {strides = array<i32>} : memref<8x8xf32, #tpu.memory_space<vmem>>, vector<1x8xf32>,
    %c3_i32 = arith.constant 3 : i32
    %55 = arith.index_cast %c3_i32 : i32 to index
    %c0_24 = arith.constant 0 : index
    %c0_25 = arith.constant 0 : index
    %56 = vector.load %arg2[%55, %c0_24, %c0_25] : memref<8x8x32xf32, #tpu.memory_space<vmem>>, vector<1x8x32xf32>
    %57 = arith.mulf %56, %17 : vector<1x8x32xf32>
    %cst_26 = arith.constant dense<0.000000e+00> : vector<1x8xf32>
    %58 = vector.multi_reduction <add>, %57, %cst_26 [2] : vector<1x8x32xf32> to vector<1x8xf32>
    %59 = arith.addf %58, %9 : vector<1x8xf32>
    %60 = arith.mulf %10, %50 : vector<1x8xf32>
    %61 = arith.addf %59, %60 : vector<1x8xf32>
    %62 = math.tanh %61 : vector<1x8xf32>
    %63 = arith.mulf %11, %62 : vector<1x8xf32>
    %64 = arith.addf %63, %11 : vector<1x8xf32>
    %65 = arith.index_cast %c3_i32 : i32 to index
    %c0_27 = arith.constant 0 : index
    %66 = vector.load %arg5[%65, %c0_27] : memref<8x8xf32, #tpu.memory_space<vmem>>, vector<1x8xf32>
    tpu.vector_store %arg5[%65, %c0_27], %64 {strides = array<i32>} : memref<8x8xf32, #tpu.memory_space<vmem>>, vector<1x8xf32>,
    %c4_i32 = arith.constant 4 : i32
    %67 = arith.index_cast %c4_i32 : i32 to index
    %c0_28 = arith.constant 0 : index
    %c0_29 = arith.constant 0 : index
    %68 = vector.load %arg2[%67, %c0_28, %c0_29] : memref<8x8x32xf32, #tpu.memory_space<vmem>>, vector<1x8x32xf32>
    %69 = arith.mulf %68, %17 : vector<1x8x32xf32>
    %cst_30 = arith.constant dense<0.000000e+00> : vector<1x8xf32>
    %70 = vector.multi_reduction <add>, %69, %cst_30 [2] : vector<1x8x32xf32> to vector<1x8xf32>
    %71 = arith.addf %70, %9 : vector<1x8xf32>
    %72 = arith.mulf %10, %62 : vector<1x8xf32>
    %73 = arith.addf %71, %72 : vector<1x8xf32>
    %74 = math.tanh %73 : vector<1x8xf32>
    %75 = arith.mulf %11, %74 : vector<1x8xf32>
    %76 = arith.addf %75, %11 : vector<1x8xf32>
    %77 = arith.index_cast %c4_i32 : i32 to index
    %c0_31 = arith.constant 0 : index
    %78 = vector.load %arg5[%77, %c0_31] : memref<8x8xf32, #tpu.memory_space<vmem>>, vector<1x8xf32>
    tpu.vector_store %arg5[%77, %c0_31], %76 {strides = array<i32>} : memref<8x8xf32, #tpu.memory_space<vmem>>, vector<1x8xf32>,
    %c5_i32 = arith.constant 5 : i32
    %79 = arith.index_cast %c5_i32 : i32 to index
    %c0_32 = arith.constant 0 : index
    %c0_33 = arith.constant 0 : index
    %80 = vector.load %arg2[%79, %c0_32, %c0_33] : memref<8x8x32xf32, #tpu.memory_space<vmem>>, vector<1x8x32xf32>
    %81 = arith.mulf %80, %17 : vector<1x8x32xf32>
    %cst_34 = arith.constant dense<0.000000e+00> : vector<1x8xf32>
    %82 = vector.multi_reduction <add>, %81, %cst_34 [2] : vector<1x8x32xf32> to vector<1x8xf32>
    %83 = arith.addf %82, %9 : vector<1x8xf32>
    %84 = arith.mulf %10, %74 : vector<1x8xf32>
    %85 = arith.addf %83, %84 : vector<1x8xf32>
    %86 = math.tanh %85 : vector<1x8xf32>
    %87 = arith.mulf %11, %86 : vector<1x8xf32>
    %88 = arith.addf %87, %11 : vector<1x8xf32>
    %89 = arith.index_cast %c5_i32 : i32 to index
    %c0_35 = arith.constant 0 : index
    %90 = vector.load %arg5[%89, %c0_35] : memref<8x8xf32, #tpu.memory_space<vmem>>, vector<1x8xf32>
    tpu.vector_store %arg5[%89, %c0_35], %88 {strides = array<i32>} : memref<8x8xf32, #tpu.memory_space<vmem>>, vector<1x8xf32>,
    %c6_i32 = arith.constant 6 : i32
    %91 = arith.index_cast %c6_i32 : i32 to index
    %c0_36 = arith.constant 0 : index
    %c0_37 = arith.constant 0 : index
    %92 = vector.load %arg2[%91, %c0_36, %c0_37] : memref<8x8x32xf32, #tpu.memory_space<vmem>>, vector<1x8x32xf32>
    %93 = arith.mulf %92, %17 : vector<1x8x32xf32>
    %cst_38 = arith.constant dense<0.000000e+00> : vector<1x8xf32>
    %94 = vector.multi_reduction <add>, %93, %cst_38 [2] : vector<1x8x32xf32> to vector<1x8xf32>
    %95 = arith.addf %94, %9 : vector<1x8xf32>
    %96 = arith.mulf %10, %86 : vector<1x8xf32>
    %97 = arith.addf %95, %96 : vector<1x8xf32>
    %98 = math.tanh %97 : vector<1x8xf32>
    %99 = arith.mulf %11, %98 : vector<1x8xf32>
    %100 = arith.addf %99, %11 : vector<1x8xf32>
    %101 = arith.index_cast %c6_i32 : i32 to index
    %c0_39 = arith.constant 0 : index
    %102 = vector.load %arg5[%101, %c0_39] : memref<8x8xf32, #tpu.memory_space<vmem>>, vector<1x8xf32>
    tpu.vector_store %arg5[%101, %c0_39], %100 {strides = array<i32>} : memref<8x8xf32, #tpu.memory_space<vmem>>, vector<1x8xf32>,
    %c7_i32 = arith.constant 7 : i32
    %103 = arith.index_cast %c7_i32 : i32 to index
    %c0_40 = arith.constant 0 : index
    %c0_41 = arith.constant 0 : index
    %104 = vector.load %arg2[%103, %c0_40, %c0_41] : memref<8x8x32xf32, #tpu.memory_space<vmem>>, vector<1x8x32xf32>
    %105 = arith.mulf %104, %17 : vector<1x8x32xf32>
    %cst_42 = arith.constant dense<0.000000e+00> : vector<1x8xf32>
    %106 = vector.multi_reduction <add>, %105, %cst_42 [2] : vector<1x8x32xf32> to vector<1x8xf32>
    %107 = arith.addf %106, %9 : vector<1x8xf32>
    %108 = arith.mulf %10, %98 : vector<1x8xf32>
    %109 = arith.addf %107, %108 : vector<1x8xf32>
    %110 = math.tanh %109 : vector<1x8xf32>
    %111 = arith.mulf %11, %110 : vector<1x8xf32>
    %112 = arith.addf %111, %11 : vector<1x8xf32>
    %113 = arith.index_cast %c7_i32 : i32 to index
    %c0_43 = arith.constant 0 : index
    %114 = vector.load %arg5[%113, %c0_43] : memref<8x8xf32, #tpu.memory_space<vmem>>, vector<1x8xf32>
    tpu.vector_store %arg5[%113, %c0_43], %112 {strides = array<i32>} : memref<8x8xf32, #tpu.memory_space<vmem>>, vector<1x8xf32>,
    %c8_i32 = arith.constant 8 : i32
    %c0_44 = arith.constant 0 : index
    %c0_45 = arith.constant 0 : index
    %115 = vector.load %arg6[%c0_44, %c0_45] : memref<1x8xf32, #tpu.memory_space<vmem>>, vector<1x8xf32>
    tpu.vector_store %arg6[%c0_44, %c0_45], %110 {strides = array<i32>} : memref<1x8xf32, #tpu.memory_space<vmem>>, vector<1x8xf32>,
    return
  }
  func.func @transform_0(%arg0: i32, %arg1: i32) -> (i32, i32, i32) {
    %c0_i32 = arith.constant 0 : i32
    %c0_i32_0 = arith.constant 0 : i32
    return %arg1, %arg0, %c0_i32 : i32, i32, i32
  }
  func.func @transform_1(%arg0: i32, %arg1: i32) -> (i32, i32) {
    %c0_i32 = arith.constant 0 : i32
    %c0_i32_0 = arith.constant 0 : i32
    %c0_i32_1 = arith.constant 0 : i32
    return %c0_i32, %c0_i32_0 : i32, i32
  }
  func.func @transform_2(%arg0: i32, %arg1: i32) -> (i32, i32) {
    %c0_i32 = arith.constant 0 : i32
    %c0_i32_0 = arith.constant 0 : i32
    %c0_i32_1 = arith.constant 0 : i32
    return %c0_i32, %c0_i32_0 : i32, i32
  }
  func.func @transform_3(%arg0: i32, %arg1: i32) -> (i32, i32) {
    %c0_i32 = arith.constant 0 : i32
    return %arg1, %arg0 : i32, i32
  }
}

</mosaic_0001>

<bundles_post_ra>
// kernel: tpu_custom_call.1
= control target key start
LH: loop header
LB: loop body
LE: loop exit
PB: predicated region body
PF: predicated region fallthrough
CT: control target
= control target key end

     0   :  { %8 = vsyncpa [#allocation4], 0  ;;  %s967_s0 = inlined_call_operand.hbm [shape: f32[16,8,32], index: 0, kind: input, shape index: {}]   ;;  %s968_s1 = inlined_call_operand.vmem [shape: f32[1,32], index: 1, kind: input, shape index: {}]   ;;  %s969_s2 = inlined_call_operand.vmem [shape: f32[1,2], index: 2, kind: input, shape index: {}]   ;;  %s970_s3 = inlined_call_operand.vmem [shape: f32[16,8], index: 3, kind: output, shape index: {}]  }
   0x1   :  { %10 = vsyncpa [#allocation4 + $0x1], 0 }
   0x2   :  { %11 = vsyncpa [#allocation5], 0  ;;  %s781_s12 = smov 0   ;;  %s783_s13 = smov 0  }
   0x3   :  { %s785_s14 = smov 0   ;;  %s787_s15 = smov 0  }
   0x4   :  { %s789_s16 = smov 0   ;;  %s791_s17 = smov 0  }
   0x5 LB: > { %s544_s18 = sadd.s32 4294967295, %s753_s17   ;;  %s38_s19 = sadd.s32 1, %s741_s14  ;;  %s753_s17 = sphi %s791_s17, %s17_s17   ;;  %s749_s16 = sphi %s789_s16, %s984_s16   ;;  %s745_s15 = sphi %s787_s15, %s983_s15   ;;  %s741_s14 = sphi %s785_s14, %s982_s14   ;;  %s737_s13 = sphi %s783_s13, %s981_s13   ;;  %s733_s12 = sphi %s781_s12, %s980_s12  }
   0x6   : > { %p45_p0 = scmp.ne.s32.totalorder %s741_s14, %s737_s13  ;;  %p46_p1 = scmp.eq.s32.totalorder %s753_s17, 0 }
   0x7   : > { %p51_p2 = scmp.ne.s32.totalorder %s737_s13, %s733_s12  ;;  %p815_p3 = scmp.eq.s32.totalorder %s544_s18, 0 }
   0x8   : > { %p47_p4 = por %p46_p1, %p45_p0  ;;  %p546_p5 = scmp.ge.s32.totalorder %s753_s17, 1 }
   0x9   : > { %p822_p6 = por %p815_p3, %p51_p2  ;;  %p132_p7 = scmp.lt.s32.totalorder %s753_s17, 3 }
   0xa   : > { %s148_s24 = sshll.u32 %s969_s2, 4  ;;  %p583_p10 = scmp.lt.s32.totalorder %s753_s17, 2  ;;  %s149_s24 = int_to_ptr.vmem [resolvable:$true] %s148_s24 }
   0xb   : > { %s974_s21 = scalar_select %p822_p6, 1, 0 }
   0xc   : > { %p830_p8 = pnand %p546_p5, %p132_p7  ;;  %s159_s26 = sand.u32 1, %s741_s14  }
   0xd   : > { %p840_p12 = pnand %p583_p10, %p47_p4  ;;  %s656_s28 = scalar_lea.vmem %s149_s24, 16 }
   0xe   : > { %s975_s25 = scalar_select %p830_p8, 1, 0 }
   0xf   : > { %p574_p9 = pneg %p830_p8  ;;  %p657_p13 = scmp.ne.s32.totalorder %s149_s24, %s656_s28 }
  0x10   : > { %p664_p5 = scmp.lt.s32.totalorder %s149_s24, %s149_s24  ;;  %p665_p7 = scmp.lt.s32.totalorder %s656_s28, %s656_s28 }
  0x11   : > { %p575_p11 = pnand %p574_p9, %p815_p3 }
  0x12   : > { %p666_p6 = por %p665_p7, %p664_p5 }
  0x13   : > { %p658_p0 = pneg %p575_p11 }
  0x15   : > { %p659_p1 = pnand %p658_p0, %p657_p13 }
  0x17   : > { %p660_p2 = pneg %p659_p1 }
  0x19   : > { %p667_p8 = pnand %p666_p6, %p660_p2 }
  0x1b   : > { %670 = shalt.err (!%p667_p8)
}
  0x1c   : > { %s755_s29 = smov [#allocation6]   ;;  %s26_s30 = sadd.s32 1, %s749_s16 }
  0x1d   : > { %577 = dma.vmem_to_smem (!%p575_p11), %s149_s24, 16, %s755_s29, [#allocation5]  }
  0x1e   : > { %s549_s4 = sshll.u32 %s159_s26, 6  ;;  %p27_p4 = scmp.ge.s32.totalorder %s26_s30, 2 }
  0x1f   : > { %s567_s5 = sshll.u32 %s749_s16, 10  ;;  %s163_s6 = scalar_lea.vmem [#allocation3], %s549_s4 }
  0x20   : > { %s171_s7 = sshll.u32 %s163_s6, 4  ;;  %s986_s30 = smov (%p27_p4, %s26_s30), 0  ;;  %s172_s7 = int_to_ptr.vmem [resolvable:$true] %s171_s7 }
  0x21   : > { %s170_s10 = scalar_lea.hbm %s967_s0, %s567_s5  ;;  %s33_s11 = ssub.s32 %s749_s16, %s986_s30 }
  0x22   : > { %p853_p6 = scmp.eq.s32.totalorder %s33_s11, 0  ;;  %s160_s18 = scalar_lea.sflag [#allocation4], %s159_s26 }
  0x23   : > { %p673_p8 = pneg %p840_p12  ;;  %s684_s22 = scalar_lea.vmem %s172_s7, 1024 }
  0x24   : > { %p685_p9 = scmp.ne.s32.totalorder %s172_s7, %s684_s22  ;;  %s756_s23 = smov [#allocation3]  }
  0x25   : > { %s689_s24 = sshll.u32 %s756_s23, 4  ;;  %s690_s24 = int_to_ptr.vmem [resolvable:$false] %s689_s24 }
  0x26   : > { %p687_p10 = pnand %p685_p9, %p673_p8  ;;  %s691_s28 = scalar_lea.vmem %s690_s24, 2048 }
  0x27   : > { %p692_p13 = scmp.lt.s32.totalorder %s172_s7, %s690_s24  ;;  %p693_p0 = scmp.lt.s32.totalorder %s691_s28, %s684_s22 }
  0x28   : > { %p688_p11 = pneg %p687_p10 }
  0x29   : > { %p694_p1 = por %p693_p0, %p692_p13 }
  0x2b   : > { %p695_p2 = pnand %p694_p1, %p688_p11 }
  0x2d   : > { %698 = shalt.err (!%p695_p2)
}
  0x2e   : > { %s757_s29 = smov 128   ;;  %s758_s26 = smov 8  }
  0x2f   : > { %581 = dma.hbm_to_vmem [thread:$0]  (!%p840_p12), %s170_s10, 1024, %s172_s7, %s160_s18, %s757_s29, %s757_s29, %s758_s26  }
  0x30   : > { %s866_s4 = scalar_select %p853_p6, %s741_s14, %s38_s19  }
  0x31   : > { %p978_p5 = scmp.ne.s32.totalorder %s975_s25, 0 }
  0x32   : > { %s185_s5 = sand.u32 (!%p978_p5), 1, %s737_s13   ;;  %p979_p7 = scmp.ne.s32.totalorder (!%p978_p5), %s974_s21, 0 }
  0x33   : > { %183 = sbr.rel (%p978_p5) target bundleno = 512 (0x200), region = 32  ;;  %s553_s6 = sshll.u32 (!%p978_p5), %s185_s5, 6 }
  0x34   : > { %s186_s8 = scalar_lea.sflag (!%p978_p5), [#allocation4], %s185_s5  ;;  %s871_s9 = scalar_lea.vmem (!%p978_p5), [#allocation3], %s553_s6 }
  0x38   : > { %724 = dma.done.wait (%p979_p7), %s186_s8, 1024  }
  0x39   : > { %726 = vsyncadd (%p979_p7), %s186_s8, 4294966272 }
  0x3a   : > { %728 = dma.done.wait (%p815_p3), [#allocation5], 16  }
  0x3b   : > { %730 = vsyncadd (%p815_p3), [#allocation5], 4294967280 }
  0x3c   : > { %198 = sfence }
  0x3d   : > { %p220_p12 = scmp.lt.s32.totalorder %s745_s15, 1  ;;  %p556_p4 = scmp.ne.s32.totalorder %s745_s15, 0 }
  0x3f   : > { %s221_s19 = scalar_select %p220_p12, %s745_s15, 1 }
  0x40   : > { %230 = sbr.rel (%p556_p4) target bundleno = 71 (0x47), region = 44 }
  0x41   : > { %s555_s25 = sshll.u32 %s221_s19, 3 }
  0x42   : > { %s886_s10 = scalar_lea.vmem %s970_s3, %s555_s25 }
  0x45   : > { %vm231_vm0 = vcmask 57344   ;;  %v759_v0 = vmov -1.0  }
  0x46   : > { %232 = vst.msk [vmem:[#allocation2] sm:$0x1] %vm231_vm0, %v759_v0 }
  0x47 PF: > { %v240_v1 = vld [vmem:[%s968_s1] sm:$0x1]  ;;  %v243_v2 = vlaneseq  ;;  %v249_v8 = vld [vmem:[%s871_s9] sm:$0xff]  ;;  %v558_v9 = vld [vmem:[%s871_s9 + $0x8] sm:$0xff]  ;;  %vm251_vm1 = vcmask 261120   ;;  %s900_s15 = sld [smem:[#allocation6]] }
  0x48   : > { %v241_v3 = vmul.f32 0.5, %v240_v1  ;;  %v560_v10 = vld [vmem:[%s871_s9 + $0x18] sm:$0xff]  ;;  %v561_v15 = vld [vmem:[%s871_s9 + $0x20] sm:$0xff]  ;;  %v760_v28 = vmov 0   ;;  %v559_v29 = vld [vmem:[%s871_s9 + $0x10] sm:$0xff]  ;;  %s557_s12 = sld [smem:[#allocation6 + $0x1]] }
  0x49   : > { %v244_v4 = vshrl.u32 %v243_v2, 7  ;;  %v275_v5 = vand.u32 127, %v243_v2  ;;  %v564_v23 = vld [vmem:[%s871_s9 + $0x38] sm:$0xff]  ;;  %638 = vset.pattern.permute.xlu1 %v760_v28  ;;  %639 = vset.pattern.permute.xlu0 %v760_v28  ;;  %v562_v31 = vld [vmem:[%s871_s9 + $0x28] sm:$0xff]  ;;  %v563_v34 = vld [vmem:[%s871_s9 + $0x30] sm:$0xff]  ;;  %vm281_vm2 = vcmask 57344  }
  0x4b   : > { %v245_v6 = vsub.s32 0, %v244_v4  ;;  %v892_v7 = vsub.s32 %v275_v5, %v244_v4 }
  0x4d   : > { %v246_v11 = vrot.slane %v241_v3, %v245_v6  ;;  %s236_s11 = smul.f32 0.25, %s900_s15  ;;  %v248_v22 = vld [vmem:[#allocation2] sm:$0x1] }
  0x4e   : > { %s235_s18 = smul.f32 0.5, %s557_s12 }
  0x4f   : > { %v250_v12 = vmul.f32 %v249_v8, %v246_v11  ;;  %v285_v13 = vmul.f32 %v558_v9, %v246_v11  ;;  %v329_v14 = vmul.f32 %v560_v10, %v246_v11  ;;  %v351_v19 = vmul.f32 %v561_v15, %v246_v11 }
  0x50   : > { %v905_v21 = vstv %s236_s11  ;;  %v417_v24 = vmul.f32 %v564_v23, %v246_v11  ;;  %v307_v30 = vmul.f32 %v559_v29, %v246_v11  ;;  %v373_v33 = vmul.f32 %v562_v31, %v246_v11  ;;  %s237_s22 = sadd.f32 %s236_s11, %s235_s18 }
  0x51   : > { %v252_v16 = vsel %vm251_vm1, %v250_v12, 0.0  ;;  %v286_v17 = vsel %vm251_vm1, %v285_v13, 0.0  ;;  %v330_v18 = vsel %vm251_vm1, %v329_v14, 0.0  ;;  %v352_v20 = vsel %vm251_vm1, %v351_v19, 0.0 }
  0x52   : > { %253 = vadd.xlane.f32.xlu0 %v252_v16  ;;  %287 = vadd.xlane.f32.xlu1 %v286_v17  ;;  %v256_v25 = vmul.f32 %v248_v22, %v905_v21  ;;  %v418_v26 = vsel %vm251_vm1, %v417_v24, 0.0  ;;  %v308_v32 = vsel %vm251_vm1, %v307_v30, 0.0  ;;  %v374_v35 = vsel %vm251_vm1, %v373_v33, 0.0 }
  0x53   : > { %v395_v36 = vmul.f32 %v563_v34, %v246_v11  ;;  %v238_v39 = vstv %s237_s22 }
  0x54   : > { %v261_v27 = vrot.slane %v256_v25, %v245_v6 }
  0x55   : > { %v396_v37 = vsel %vm251_vm1, %v395_v36, 0.0 }
  0x56   : > { %331 = vadd.xlane.f32.xlu1 %v330_v18 }
  0x5a   : > { %353 = vadd.xlane.f32.xlu1 %v352_v20 }
  0x68   : > { %263 = vbcast.lane.b32.xlu0 %v261_v27, 256 }
  0x87   : > { %309 = vadd.xlane.f32.xlu0 %v308_v32 }
  0x8b   : > { %375 = vadd.xlane.f32.xlu0 %v374_v35 }
  0x8f   : > { %397 = vadd.xlane.f32.xlu0 %v396_v37 }
  0x93   : > { %419 = vadd.xlane.f32.xlu0 %v418_v26 }
  0xdb   : > { %v254_v38 = vpop.xlane.xlu0 %253  ;;  %v288_v43 = vpop.xlane.xlu1 %287 }
  0xdc   : > { %v255_v40 = vadd.f32 %v254_v38, %v238_v39  ;;  %v289_v44 = vadd.f32 %v288_v43, %v238_v39 }
  0xdf   : > { %v264_v41 = vpop.permute.xlu0 %263  ;;  %v332_v57 = vpop.xlane.xlu1 %331 }
  0xe0   : > { %v266_v42 = vadd.f32 %v264_v41, %v255_v40  ;;  %v333_v58 = vadd.f32 %v332_v57, %v238_v39 }
  0xe2   : > { %640 = vtanh.f32 %v266_v42 }
  0xe3   : > { %v354_v0 = vpop.xlane.xlu1 %353 }
  0xe4   : > { %v355_v1 = vadd.f32 %v354_v0, %v238_v39 }
  0xef   : > { %v641_v45 = vpop.eup %640 }
  0xf0   : > { %v290_v46 = vmul.f32 %v641_v45, %v905_v21  ;;  %v268_v47 = vmul.f32 0.5, %v641_v45 }
  0xf2   : > { %v291_v48 = vadd.f32 %v290_v46, %v289_v44  ;;  %v269_v49 = vadd.f32 0.5, %v268_v47 }
  0xf4   : > { %642 = vtanh.f32 %v291_v48  ;;  %272 = vperm.xlu1 %638, %v269_v49  }
 0x101   : > { %v643_v50 = vpop.eup %642 }
 0x102   : > { %v293_v51 = vmul.f32 0.5, %v643_v50  ;;  %v312_v55 = vmul.f32 %v643_v50, %v905_v21 }
 0x104   : > { %v294_v52 = vadd.f32 0.5, %v293_v51 }
 0x106   : > { %297 = vperm.xlu0 %639, %v294_v52  }
 0x110   : > { %v310_v53 = vpop.xlane.xlu0 %309 }
 0x111   : > { %v311_v54 = vadd.f32 %v310_v53, %v238_v39 }
 0x113   : > { %v313_v56 = vadd.f32 %v312_v55, %v311_v54 }
 0x114   : > { %v376_v8 = vpop.xlane.xlu0 %375 }
 0x115   : > { %644 = vtanh.f32 %v313_v56  ;;  %v377_v9 = vadd.f32 %v376_v8, %v238_v39 }
 0x118   : > { %v398_v15 = vpop.xlane.xlu0 %397 }
 0x119   : > { %v399_v16 = vadd.f32 %v398_v15, %v238_v39 }
 0x11c   : > { %v420_v23 = vpop.xlane.xlu0 %419 }
 0x11d   : > { %v421_v24 = vadd.f32 %v420_v23, %v238_v39 }
 0x122   : > { %v645_v59 = vpop.eup %644 }
 0x123   : > { %v334_v60 = vmul.f32 %v645_v59, %v905_v21  ;;  %v315_v61 = vmul.f32 0.5, %v645_v59 }
 0x125   : > { %v335_v62 = vadd.f32 %v334_v60, %v333_v58  ;;  %v316_v63 = vadd.f32 0.5, %v315_v61 }
 0x127   : > { %646 = vtanh.f32 %v335_v62  ;;  %319 = vperm.xlu1 %638, %v316_v63  }
 0x134   : > { %v647_v2 = vpop.eup %646 }
 0x135   : > { %v356_v3 = vmul.f32 %v647_v2, %v905_v21  ;;  %v337_v4 = vmul.f32 0.5, %v647_v2 }
 0x137   : > { %v357_v5 = vadd.f32 %v356_v3, %v355_v1  ;;  %v338_v6 = vadd.f32 0.5, %v337_v4 }
 0x139   : > { %648 = vtanh.f32 %v357_v5  ;;  %341 = vperm.xlu0 %639, %v338_v6  }
 0x146   : > { %v649_v10 = vpop.eup %648 }
 0x147   : > { %v378_v11 = vmul.f32 %v649_v10, %v905_v21  ;;  %v359_v12 = vmul.f32 0.5, %v649_v10 }
 0x149   : > { %v379_v13 = vadd.f32 %v378_v11, %v377_v9  ;;  %v360_v14 = vadd.f32 0.5, %v359_v12 }
 0x14b   : > { %650 = vtanh.f32 %v379_v13  ;;  %363 = vperm.xlu1 %638, %v360_v14  }
 0x158   : > { %v651_v17 = vpop.eup %650 }
 0x159   : > { %v400_v18 = vmul.f32 %v651_v17, %v905_v21  ;;  %v381_v19 = vmul.f32 0.5, %v651_v17 }
 0x15b   : > { %v401_v20 = vadd.f32 %v400_v18, %v399_v16  ;;  %v382_v22 = vadd.f32 0.5, %v381_v19 }
 0x15d   : > { %652 = vtanh.f32 %v401_v20  ;;  %385 = vperm.xlu1 %638, %v382_v22  }
 0x16a   : > { %v653_v25 = vpop.eup %652 }
 0x16b   : > { %v422_v26 = vmul.f32 %v653_v25, %v905_v21  ;;  %v403_v27 = vmul.f32 0.5, %v653_v25 }
 0x16d   : > { %v423_v28 = vadd.f32 %v422_v26, %v421_v24  ;;  %v404_v29 = vadd.f32 0.5, %v403_v27 }
 0x16f   : > { %654 = vtanh.f32 %v423_v28  ;;  %407 = vperm.xlu1 %638, %v404_v29   ;;  %v273_v30 = vpop.permute.xlu1 %272 }
 0x170   : > { %v279_v31 = vrot.slane %v273_v30, %v892_v7 }
 0x172   : > { %282 = vst.msk [vmem:[%s886_s10] sm:$0x1] %vm281_vm2, %v279_v31 }
 0x17c   : > { %v655_v32 = vpop.eup %654 }
 0x17d   : > { %439 = vperm.xlu0 %639, %v655_v32   ;;  %v425_v33 = vmul.f32 0.5, %v655_v32 }
 0x17f   : > { %v426_v34 = vadd.f32 0.5, %v425_v33 }
 0x181   : > { %v298_v21 = vpop.permute.xlu0 %297  ;;  %429 = vperm.xlu1 %638, %v426_v34  }
 0x182   : > { %v302_v35 = vrot.slane %v298_v21, %v892_v7 }
 0x184   : > { %304 = vst.msk [vmem:[%s886_s10 + $0x1] sm:$0x1] %vm281_vm2, %v302_v35 }
 0x1a2   : > { %v320_v36 = vpop.permute.xlu1 %319 }
 0x1a3   : > { %v324_v37 = vrot.slane %v320_v36, %v892_v7 }
 0x1a5   : > { %326 = vst.msk [vmem:[%s886_s10 + $0x2] sm:$0x1] %vm281_vm2, %v324_v37 }
 0x1b4   : > { %v342_v38 = vpop.permute.xlu0 %341 }
 0x1b5   : > { %v346_v39 = vrot.slane %v342_v38, %v892_v7 }
 0x1b7   : > { %348 = vst.msk [vmem:[%s886_s10 + $0x3] sm:$0x1] %vm281_vm2, %v346_v39 }
 0x1c6   : > { %v364_v40 = vpop.permute.xlu1 %363 }
 0x1c7   : > { %v368_v41 = vrot.slane %v364_v40, %v892_v7 }
 0x1c9   : > { %370 = vst.msk [vmem:[%s886_s10 + $0x4] sm:$0x1] %vm281_vm2, %v368_v41 }
 0x1d8   : > { %v386_v42 = vpop.permute.xlu1 %385 }
 0x1d9   : > { %v390_v43 = vrot.slane %v386_v42, %v892_v7 }
 0x1db   : > { %392 = vst.msk [vmem:[%s886_s10 + $0x5] sm:$0x1] %vm281_vm2, %v390_v43 }
 0x1ea   : > { %v408_v44 = vpop.permute.xlu1 %407 }
 0x1eb   : > { %v412_v45 = vrot.slane %v408_v44, %v892_v7 }
 0x1ed   : > { %414 = vst.msk [vmem:[%s886_s10 + $0x6] sm:$0x1] %vm281_vm2, %v412_v45 }
 0x1f8   : > { %v440_v46 = vpop.permute.xlu0 %439 }
 0x1f9   : > { %v444_v47 = vrot.slane %v440_v46, %v892_v7 }
 0x1fb   : > { %446 = vst.msk [vmem:[#allocation2] sm:$0x1] %vm281_vm2, %v444_v47 }
 0x1fc   : > { %v430_v48 = vpop.permute.xlu1 %429 }
 0x1fd   : > { %v434_v49 = vrot.slane %v430_v48, %v892_v7 }
 0x1ff   : > { %436 = vst.msk [vmem:[%s886_s10 + $0x7] sm:$0x1] %vm281_vm2, %v434_v49 }
 0x200 PF: > { %s17_s17 = sadd.s32 1, %s753_s17   ;;  %s980_s12 = smov %s737_s13 }
 0x201   : > { %p14_p3 = scmp.ge.s32.totalorder %s17_s17, 4   ;;  %s981_s13 = smov %s741_s14 }
 0x202   : > { %s982_s14 = smov %s866_s4  ;;  %s983_s15 = smov %s749_s16 }
 0x203   : > { %s984_s16 = smov %s986_s30  ;;  %16 = sbr.rel (!%p14_p3) target bundleno = 5 (0x5), region = 88 }
 0x208   :  { %472 = vsyncpa [#allocation4], 1 }
 0x209   :  { %474 = vsyncpa [#allocation4 + $0x1], 1 }
 0x20a   :  { %475 = vsyncpa [#allocation5], 1 }
 0x20b   :  { %477 = vsyncpa [#allocation5 + $0x1], 1 }

</bundles_post_ra>
